<compile_context>
chip_gen: v6e
topology: v6e:2x2x1
jax: 0.10.0
libtpu: 0.0.40
codegen_flags: <defaults>
</compile_context>

<pallas_src>
import functools

import jax
import jax.numpy as jnp
from jax.experimental import pallas as pl
from jax.experimental.pallas import tpu as pltpu


def _norm_kernel(x_ref, alpha_ref, bias_ref, o_ref, *, eps, d_model, d_pad):
    """Norm over the last axis of a (row_tile, d_pad) block.

    Matches torch: alpha * (x - mean) / (std_unbiased + eps) + bias
    (torch.std divides by N-1; eps is added to std, not var).

    Two-pass variance (sum((x - mean)^2)) is used instead of the single-pass
    sumsq - sum*mean form to avoid catastrophic cancellation when |mean| >> std
    (matches the torch formulation numerically).  x is already resident in
    VMEM, so the second pass is pure VPU/XLU work hidden under the HBM stream.
    """
    x = x_ref[...].astype(jnp.float32)   # (rt, d_pad)
    alpha = alpha_ref[...]               # (1, d_pad)  f32 (cast hoisted to wrapper)
    bias = bias_ref[...]                 # (1, d_pad)  f32

    # Pass 1: mean over the true (unpadded) feature count.  Padded lanes of x
    # are zero, so the sum is unaffected by padding.
    mean = jnp.sum(x, axis=-1, keepdims=True) * (1.0 / d_model)

    # Pass 2: centered values.  Mask padded lanes so they do not pollute the
    # variance (they would otherwise contribute (-mean)^2 each).
    diff = x - mean
    if d_pad != d_model:
        lane = jax.lax.broadcasted_iota(jnp.int32, (1, d_pad), 1)
        diff = jnp.where(lane < d_model, diff, 0.0)

    # Unbiased variance (N-1 divisor, like torch.std).  Guard d_model == 1
    # (torch would produce nan there; we keep a finite value — edge case only).
    var = jnp.sum(diff * diff, axis=-1, keepdims=True) * (1.0 / max(d_model - 1, 1))
    std = jnp.sqrt(var)

    # Per-row reciprocal on the EUP; the per-element op becomes a VPU multiply.
    # approx=False keeps the 1e-5 match to torch; EUP work is per-row and is
    # fully hidden under the HBM stream.
    inv = pl.reciprocal(std + eps, approx=False)

    # TODO(synk): on v7x with bf16 I/O the ~6 f32 VPU ops/element here approach
    # VALU saturation; doing the final affine in bf16 would trim that, at the
    # cost of diverging slightly from the f32-math reference.  Kept in f32.
    o_ref[...] = (alpha * diff * inv + bias).astype(o_ref.dtype)


def _round_up(n, m):
    return ((n + m - 1) // m) * m


def _min_blocks_for_cores():
    """v7x has 2 TensorCores/chip; keep >=2 blocks so the 'parallel' row axis
    actually shards across both.  v5e/v6e are single-TC — no cap there."""
    try:
        kind = jax.devices()[0].device_kind.lower()
    except Exception:
        return 1
    return 2 if "v7" in kind else 1


def norm_pallas(x, alpha, bias, eps=1e-6, *,
                target_block_bytes=4 * 1024 * 1024,
                vmem_working_set_bytes=24 * 1024 * 1024):
    """LayerNorm-style Norm matching the PyTorch module exactly.

    x:     (..., d_model)
    alpha: (d_model,)
    bias:  (d_model,)
    """
    orig_shape = x.shape
    d_model = orig_shape[-1]
    rows = 1
    for s in orig_shape[:-1]:
        rows *= s
    x2 = x.reshape(rows, d_model)

    # Lane-dense feature axis: pad to a multiple of 128 only when needed so
    # output stores are full (unmasked) vst's.  Padded lanes are zero and are
    # masked out of the variance inside the kernel; output padding is sliced
    # away in the wrapper.
    d_pad = _round_up(d_model, 128)
    if d_pad != d_model:
        x2 = jnp.pad(x2, ((0, 0), (0, d_pad - d_model)))

    # Fold params to f32 once in the wrapper; constant index_map => no re-DMA
    # per grid step and no per-tile cast inside the kernel.
    alpha2 = jnp.pad(alpha.astype(jnp.float32), (0, d_pad - d_model)).reshape(1, d_pad)
    bias2 = jnp.pad(bias.astype(jnp.float32), (0, d_pad - d_model)).reshape(1, d_pad)

    # ---- Tile selection: byte-targeted and dtype-aware -------------------
    # Per-grid-step overhead is ~0.35 us, so aim for ~4 MiB of x per block
    # (dtype-aware: bf16 inputs get 2x more rows than f32 for the same bytes).
    itemsize = jnp.dtype(x2.dtype).itemsize
    target_rows = max(8, target_block_bytes // (itemsize * d_pad))

    # VMEM working-set cap (conservative for v7x's 64 MiB/TC):
    #   in + out double-buffered      : 2 * 2 * rt * d_pad * itemsize
    #   f32 temporaries (x, diff)     : ~2 * rt * d_pad * 4
    #   params (double-buffered, f32) : 2 * 2 * d_pad * 4
    params_bytes = 2 * 2 * d_pad * 4
    margin_bytes = 2 * 1024 * 1024
    avail = max(0, vmem_working_set_bytes - params_bytes - margin_bytes)
    per_row_bytes = d_pad * (4 * itemsize + 8)
    budget_rows = max(8, avail // per_row_bytes)

    rt = min(target_rows, budget_rows, _round_up(rows, 8))

    # On v7x, ensure at least one block per TensorCore so the parallel row
    # axis shards across both cores (cost on other gens: at most one extra
    # ~0.35 us grid step, so the cap is only applied when detected).
    min_blocks = _min_blocks_for_cores()
    if min_blocks > 1 and rows > 8 * min_blocks:
        rt = min(rt, _round_up(-(-rows // min_blocks), 8))

    rt = max(8, (rt // 8) * 8)

    # No wrapper-side row padding / post-slice on the row axis: the tail block
    # is handled by Pallas (OOB reads padded, OOB stores masked), so the kernel
    # does exactly one HBM read + one HBM write of x.
    grid = pl.cdiv(rows, rt)

    kernel = functools.partial(_norm_kernel, eps=eps, d_model=d_model, d_pad=d_pad)

    out = pl.pallas_call(
        kernel,
        out_shape=jax.ShapeDtypeStruct((rows, d_pad), x.dtype),
        grid_spec=pltpu.PrefetchScalarGridSpec(
            num_scalar_prefetch=0,
            grid=(grid,),
            in_specs=[
                pl.BlockSpec((rt, d_pad), lambda i: (i, 0)),
                pl.BlockSpec((1, d_pad), lambda i: (0, 0)),
                pl.BlockSpec((1, d_pad), lambda i: (0, 0)),
            ],
            out_specs=pl.BlockSpec((rt, d_pad), lambda i: (i, 0)),
        ),
        compiler_params=pltpu.CompilerParams(
            # Row axis is fully parallel -> sharded across TensorCores on v7x.
            dimension_semantics=("parallel",),
            # Raise v5e's 16 MiB default scoped limit; still safe within
            # v7x's 64 MiB physical VMEM.
            vmem_limit_bytes=32 * 1024 * 1024,
        ),
    )(x2, alpha2, bias2)

    if d_pad != d_model:
        out = out[:, :d_model]
    return out.reshape(orig_shape)


if __name__ == "__main__":
    # Shapes consistent with the forward: (batch, seq, d_model) with the
    # module's d_model = 1024 (small batch/seq keep the test tiny).
    batch, seq, d_model = 2, 8, 1024
    key = jax.random.PRNGKey(0)
    x = jax.random.normal(key, (batch, seq, d_model), dtype=jnp.float32)

    # Deterministic parameter init matching nn.Parameter(torch.ones/zeros)
    alpha = jnp.ones((d_model,), dtype=jnp.float32)
    bias = jnp.zeros((d_model,), dtype=jnp.float32)

    def ref_norm(xx, a, b, eps):
        mean = jnp.mean(xx, axis=-1, keepdims=True)
        std = jnp.sqrt(
            jnp.sum((xx - mean) ** 2, axis=-1, keepdims=True)
            / (xx.shape[-1] - 1)
        )
        return a * (xx - mean) / (std + eps) + b

    out = norm_pallas(x, alpha, bias, eps=1e-6)
    jax.block_until_ready(out)
    ref = ref_norm(x, alpha, bias, 1e-6)
    assert jnp.allclose(out, ref, atol=1e-5, rtol=1e-5), float(
        jnp.max(jnp.abs(out - ref))
    )

    # Ragged row count (3*5 = 15 rows) exercises the masked tail-block path,
    # and a non-zero mean exercises the two-pass variance (no cancellation).
    x2 = 3.0 * jax.random.normal(
        jax.random.PRNGKey(1), (3, 5, d_model), jnp.float32
    ) + 5.0
    out2 = norm_pallas(x2, alpha, bias, eps=1e-6)
    jax.block_until_ready(out2)
    ref2 = ref_norm(x2, alpha, bias, 1e-6)
    assert jnp.allclose(out2, ref2, atol=1e-5, rtol=1e-4), float(
        jnp.max(jnp.abs(out2 - ref2))
    )

    # Non-128-multiple feature width exercises the pad + lane-mask path.
    d_odd = 100
    x3 = jax.random.normal(jax.random.PRNGKey(2), (2, 4, d_odd), jnp.float32)
    a3 = jnp.ones((d_odd,), jnp.float32)
    b3 = jnp.zeros((d_odd,), jnp.float32)
    out3 = norm_pallas(x3, a3, b3, eps=1e-6)
    jax.block_until_ready(out3)
    ref3 = ref_norm(x3, a3, b3, 1e-6)
    assert jnp.allclose(out3, ref3, atol=1e-5, rtol=1e-5), float(
        jnp.max(jnp.abs(out3 - ref3))
    )

    print("KERNEL_OK")
</pallas_src>

<mosaic_0001>
module attributes {stable_mosaic.version = 11 : i64} {
  func.func @_norm_kernel(%arg0: i32, %arg1: memref<16x1024xf32, #tpu.memory_space<vmem>>, %arg2: memref<1x1024xf32, #tpu.memory_space<vmem>>, %arg3: memref<1x1024xf32, #tpu.memory_space<vmem>>, %arg4: memref<16x1024xf32, #tpu.memory_space<vmem>>) attributes {dimension_semantics = [#tpu.dimension_semantics<parallel>], iteration_bounds = array<i64: 1>, scalar_prefetch = 0 : i64, scratch_operands = 0 : i64, tpu.core_type = #tpu.core_type<tc>, window_params = [{transform_indices = @transform_0, window_bounds = array<i64: 16, 1024>}, {pipeline_mode = #tpu.pipeline_mode<synchronous>, transform_indices = @transform_1, window_bounds = array<i64: 1, 1024>}, {pipeline_mode = #tpu.pipeline_mode<synchronous>, transform_indices = @transform_2, window_bounds = array<i64: 1, 1024>}, {transform_indices = @transform_3, window_bounds = array<i64: 16, 1024>}]} {
    %c0 = arith.constant 0 : index
    %c0_0 = arith.constant 0 : index
    %0 = vector.load %arg1[%c0, %c0_0] : memref<16x1024xf32, #tpu.memory_space<vmem>>, vector<16x1024xf32>
    %c0_1 = arith.constant 0 : index
    %c0_2 = arith.constant 0 : index
    %1 = vector.load %arg2[%c0_1, %c0_2] : memref<1x1024xf32, #tpu.memory_space<vmem>>, vector<1x1024xf32>
    %c0_3 = arith.constant 0 : index
    %c0_4 = arith.constant 0 : index
    %2 = vector.load %arg3[%c0_3, %c0_4] : memref<1x1024xf32, #tpu.memory_space<vmem>>, vector<1x1024xf32>
    %cst = arith.constant dense<0.000000e+00> : vector<16xf32>
    %3 = vector.multi_reduction <add>, %0, %cst [1] : vector<16x1024xf32> to vector<16xf32>
    %4 = vector.shape_cast %3 : vector<16xf32> to vector<16x1xf32>
    %cst_5 = arith.constant 9.765625E-4 : f32
    %5 = vector.broadcast %cst_5 : f32 to vector<16x1xf32>
    %6 = arith.mulf %4, %5 : vector<16x1xf32>
    %7 = vector.broadcast %6 : vector<16x1xf32> to vector<16x1024xf32>
    %8 = arith.subf %0, %7 : vector<16x1024xf32>
    %9 = arith.mulf %8, %8 : vector<16x1024xf32>
    %cst_6 = arith.constant dense<0.000000e+00> : vector<16xf32>
    %10 = vector.multi_reduction <add>, %9, %cst_6 [1] : vector<16x1024xf32> to vector<16xf32>
    %11 = vector.shape_cast %10 : vector<16xf32> to vector<16x1xf32>
    %cst_7 = arith.constant 9.77517105E-4 : f32
    %12 = vector.broadcast %cst_7 : f32 to vector<16x1xf32>
    %13 = arith.mulf %11, %12 : vector<16x1xf32>
    %14 = math.sqrt %13 : vector<16x1xf32>
    %cst_8 = arith.constant 9.99999997E-7 : f32
    %15 = vector.broadcast %cst_8 : f32 to vector<16x1xf32>
    %16 = arith.addf %14, %15 : vector<16x1xf32>
    %17 = tpu.reciprocal %16 : vector<16x1xf32> -> vector<16x1xf32>
    %18 = vector.broadcast %1 : vector<1x1024xf32> to vector<16x1024xf32>
    %19 = arith.mulf %18, %8 : vector<16x1024xf32>
    %20 = vector.broadcast %17 : vector<16x1xf32> to vector<16x1024xf32>
    %21 = arith.mulf %19, %20 : vector<16x1024xf32>
    %22 = vector.broadcast %2 : vector<1x1024xf32> to vector<16x1024xf32>
    %23 = arith.addf %21, %22 : vector<16x1024xf32>
    %c0_9 = arith.constant 0 : index
    %c0_10 = arith.constant 0 : index
    %24 = vector.load %arg4[%c0_9, %c0_10] : memref<16x1024xf32, #tpu.memory_space<vmem>>, vector<16x1024xf32>
    tpu.vector_store %arg4[%c0_9, %c0_10], %23 {strides = array<i32>} : memref<16x1024xf32, #tpu.memory_space<vmem>>, vector<16x1024xf32>,
    return
  }
  func.func @transform_0(%arg0: i32) -> (i32, i32) {
    %c0_i32 = arith.constant 0 : i32
    %c0_i32_0 = arith.constant 0 : i32
    return %arg0, %c0_i32 : i32, i32
  }
  func.func @transform_1(%arg0: i32) -> (i32, i32) {
    %c0_i32 = arith.constant 0 : i32
    %c0_i32_0 = arith.constant 0 : i32
    %c0_i32_1 = arith.constant 0 : i32
    return %c0_i32, %c0_i32_0 : i32, i32
  }
  func.func @transform_2(%arg0: i32) -> (i32, i32) {
    %c0_i32 = arith.constant 0 : i32
    %c0_i32_0 = arith.constant 0 : i32
    %c0_i32_1 = arith.constant 0 : i32
    return %c0_i32, %c0_i32_0 : i32, i32
  }
  func.func @transform_3(%arg0: i32) -> (i32, i32) {
    %c0_i32 = arith.constant 0 : i32
    %c0_i32_0 = arith.constant 0 : i32
    return %arg0, %c0_i32 : i32, i32
  }
}

</mosaic_0001>

<bundles_post_ra>
// kernel: tpu_custom_call.1
= control target key start
LH: loop header
LB: loop body
LE: loop exit
PB: predicated region body
PF: predicated region fallthrough
CT: control target
= control target key end

     0   :  { %8 = vsyncpa [#allocation3], 0  ;;  %s548_s0 = inlined_call_operand.hbm [shape: f32[16,1024], index: 0, kind: input, shape index: {}]   ;;  %s549_s1 = inlined_call_operand.hbm [shape: f32[1,1024], index: 1, kind: input, shape index: {}]   ;;  %s550_s2 = inlined_call_operand.hbm [shape: f32[1,1024], index: 2, kind: input, shape index: {}]   ;;  %s551_s3 = inlined_call_operand.hbm [shape: f32[16,1024], index: 3, kind: output, shape index: {}]  }
   0x1   :  { %9 = vsyncpa [#allocation6], 0 }
   0x2   :  { %10 = vsyncpa [#allocation4], 0  ;;  %s424_s12 = smov [#allocation5]   ;;  %s425_s14 = smov [#allocation2]  }
   0x3   :  { %s29_s13 = sshll.u32 %s424_s12, 4  ;;  %s16_s15 = sshll.u32 %s425_s14, 4  ;;  %s30_s13 = int_to_ptr.vmem [resolvable:$true] %s29_s13  ;;  %s17_s15 = int_to_ptr.vmem [resolvable:$true] %s16_s15 }
   0x4   :  { %s346_s16 = scalar_lea.vmem %s30_s13, 128  ;;  %p351_p1 = scmp.lt.s32.totalorder %s30_s13, %s30_s13 }
   0x5   :  { %p347_p0 = scmp.ne.s32.totalorder %s30_s13, %s346_s16  ;;  %p352_p2 = scmp.lt.s32.totalorder %s346_s16, %s346_s16 }
   0x7   :  { %p353_p3 = por %p352_p2, %p351_p1 }
   0x9   :  { %p354_p4 = pnand %p353_p3, %p347_p0 }
   0xb   :  { %357 = shalt.err (!%p354_p4)
}
   0xc   :  { %32 = dma.hbm_to_vmem [thread:$0]  %s549_s1, 128, %s30_s13, [#allocation6]  }
   0xd   :  { %s366_s19 = scalar_lea.vmem %s17_s15, 2048  ;;  %p371_p6 = scmp.lt.s32.totalorder %s17_s15, %s17_s15 }
   0xe   :  { %p367_p5 = scmp.ne.s32.totalorder %s17_s15, %s366_s19  ;;  %p372_p7 = scmp.lt.s32.totalorder %s366_s19, %s366_s19 }
  0x10   :  { %p373_p8 = por %p372_p7, %p371_p6 }
  0x12   :  { %p374_p9 = pnand %p373_p8, %p367_p5 }
  0x14   :  { %377 = shalt.err (!%p374_p9)
}
  0x15   :  { %s426_s20 = smov 1024   ;;  %s427_s21 = smov 64  }
  0x16   :  { %22 = dma.hbm_to_vmem [thread:$0]  %s548_s0, 2048, %s17_s15, [#allocation3], %s426_s20, %s426_s20, %s427_s21  }
  0x17   :  { %s428_s24 = smov [#allocation7]  }
  0x18   :  { %s39_s25 = sshll.u32 %s428_s24, 4  ;;  %s40_s25 = int_to_ptr.vmem [resolvable:$true] %s39_s25 }
  0x19   :  { %s386_s1 = scalar_lea.vmem %s40_s25, 128  ;;  %p391_p11 = scmp.lt.s32.totalorder %s40_s25, %s40_s25 }
  0x1a   :  { %p387_p10 = scmp.ne.s32.totalorder %s40_s25, %s386_s1  ;;  %p392_p12 = scmp.lt.s32.totalorder %s386_s1, %s386_s1 }
  0x1c   :  { %p393_p13 = por %p392_p12, %p391_p11 }
  0x1e   :  { %p394_p0 = pnand %p393_p13, %p387_p10 }
  0x20   :  { %397 = shalt.err (!%p394_p0)
}
  0x21   :  { %42 = dma.hbm_to_vmem [thread:$0]  %s550_s2, 128, %s40_s25, [#allocation6]  }
  0x22   :  { %418 = dma.done.wait [#allocation3], 2048  }
  0x23   :  { %419 = vsyncadd [#allocation3], 4294965248 }
  0x24   :  { %420 = dma.done.wait [#allocation6], 256  }
  0x25   :  { %421 = vsyncadd [#allocation6], 4294967040  ;;  %v52_v0 = vld [vmem:[#allocation2] sm:$0xff]  ;;  %v53_v1 = vld [vmem:[#allocation2 + $0x8] sm:$0xff]  ;;  %s429_s0 = smov [#allocation8]  }
  0x26   :  { %v54_v2 = vld [vmem:[#allocation2 + $0x10] sm:$0xff]  ;;  %v70_v3 = vadd.f32 %v53_v1, %v52_v0  ;;  %v55_v4 = vld [vmem:[#allocation2 + $0x18] sm:$0xff]  ;;  %v60_v5 = vld [vmem:[#allocation2 + $0x40] sm:$0xff]  ;;  %s311_s2 = sshll.u32 %s429_s0, 4  ;;  %s312_s2 = int_to_ptr.vmem [resolvable:$true] %s311_s2 }
  0x27   :  { %v61_v7 = vld [vmem:[#allocation2 + $0x48] sm:$0xff]  ;;  %v62_v8 = vld [vmem:[#allocation2 + $0x50] sm:$0xff]  ;;  %v56_v9 = vld [vmem:[#allocation2 + $0x20] sm:$0xff]  ;;  %s398_s28 = scalar_lea.vmem %s312_s2, 2048  ;;  %p403_p2 = scmp.lt.s32.totalorder %s312_s2, %s312_s2 }
  0x28   :  { %v71_v6 = vadd.f32 %v70_v3, %v54_v2  ;;  %v79_v10 = vadd.f32 %v61_v7, %v60_v5  ;;  %v63_v12 = vld [vmem:[#allocation2 + $0x58] sm:$0xff]  ;;  %v57_v13 = vld [vmem:[#allocation2 + $0x28] sm:$0xff]  ;;  %v64_v16 = vld [vmem:[#allocation2 + $0x60] sm:$0xff]  ;;  %p399_p1 = scmp.ne.s32.totalorder %s312_s2, %s398_s28  ;;  %p404_p3 = scmp.lt.s32.totalorder %s398_s28, %s398_s28 }
  0x29   :  { %v58_v17 = vld [vmem:[#allocation2 + $0x30] sm:$0xff]  ;;  %v65_v20 = vld [vmem:[#allocation2 + $0x68] sm:$0xff]  ;;  %v59_v21 = vld [vmem:[#allocation2 + $0x38] sm:$0xff] }
  0x2a   :  { %v72_v11 = vadd.f32 %v71_v6, %v55_v4  ;;  %v80_v14 = vadd.f32 %v79_v10, %v62_v8  ;;  %v66_v24 = vld [vmem:[#allocation2 + $0x70] sm:$0xff]  ;;  %v67_v27 = vld [vmem:[#allocation2 + $0x78] sm:$0xff]  ;;  %p405_p4 = por %p404_p3, %p403_p2 }
  0x2c   :  { %v73_v15 = vadd.f32 %v72_v11, %v56_v9  ;;  %v81_v18 = vadd.f32 %v80_v14, %v63_v12  ;;  %p406_p5 = pnand %p405_p4, %p399_p1 }
  0x2e   :  { %v74_v19 = vadd.f32 %v73_v15, %v57_v13  ;;  %v82_v22 = vadd.f32 %v81_v18, %v64_v16 }
  0x30   :  { %v75_v23 = vadd.f32 %v74_v19, %v58_v17  ;;  %v83_v25 = vadd.f32 %v82_v22, %v65_v20  ;;  %v161_v22 = vlaneseq }
  0x32   :  { %v76_v26 = vadd.f32 %v75_v23, %v59_v21  ;;  %v84_v28 = vadd.f32 %v83_v25, %v66_v24 }
  0x34   :  { %77 = vadd.xlane.f32.xlu0 %v76_v26  ;;  %v85_v29 = vadd.f32 %v84_v28, %v67_v27 }
  0x38   :  { %86 = vadd.xlane.f32.xlu0 %v85_v29 }
  0xbd   :  { %v78_v30 = vpop.xlane.xlu0 %77 }
  0xbe   :  { %v88_v31 = vmul.f32 0.0009765625, %v78_v30 }
  0xc0   :  { %v462_v32 = vsub.f32 %v52_v0, %v88_v31  ;;  %v464_v33 = vsub.f32 %v53_v1, %v88_v31  ;;  %v466_v34 = vsub.f32 %v54_v2, %v88_v31  ;;  %v468_v37 = vsub.f32 %v55_v4, %v88_v31 }
  0xc1   :  { %v87_v35 = vpop.xlane.xlu0 %86  ;;  %v474_v40 = vsub.f32 %v56_v9, %v88_v31  ;;  %v478_v43 = vsub.f32 %v57_v13, %v88_v31  ;;  %v488_v49 = vsub.f32 %v58_v17, %v88_v31  ;;  %v498_v55 = vsub.f32 %v59_v21, %v88_v31 }
  0xc2   :  { %v89_v36 = vmul.f32 0.0009765625, %v87_v35  ;;  %v106_v38 = vmul.f32 %v462_v32, %v462_v32  ;;  %v107_v39 = vmul.f32 %v464_v33, %v464_v33  ;;  %v108_v41 = vmul.f32 %v466_v34, %v466_v34 }
  0xc3   :  { %v109_v44 = vmul.f32 %v468_v37, %v468_v37  ;;  %v110_v50 = vmul.f32 %v474_v40, %v474_v40  ;;  %v111_v56 = vmul.f32 %v478_v43, %v478_v43  ;;  %v112_v61 = vmul.f32 %v488_v49, %v488_v49 }
  0xc4   :  { %v122_v42 = vadd.f32 %v107_v39, %v106_v38  ;;  %v482_v46 = vsub.f32 %v60_v5, %v89_v36  ;;  %v484_v47 = vsub.f32 %v61_v7, %v89_v36  ;;  %v486_v48 = vsub.f32 %v62_v8, %v89_v36 }
  0xc5   :  { %v492_v52 = vsub.f32 %v63_v12, %v89_v36  ;;  %v502_v58 = vsub.f32 %v64_v16, %v89_v36  ;;  %v508_v63 = vsub.f32 %v65_v20, %v89_v36  ;;  %v113_v2 = vmul.f32 %v498_v55, %v498_v55 }
  0xc6   :  { %v123_v45 = vadd.f32 %v122_v42, %v108_v41  ;;  %v114_v53 = vmul.f32 %v482_v46, %v482_v46  ;;  %v115_v54 = vmul.f32 %v484_v47, %v484_v47  ;;  %v116_v59 = vmul.f32 %v486_v48, %v486_v48 }
  0xc7   :  { %v117_v0 = vmul.f32 %v492_v52, %v492_v52  ;;  %v514_v4 = vsub.f32 %v66_v24, %v89_v36  ;;  %v118_v5 = vmul.f32 %v502_v58, %v502_v58  ;;  %v518_v8 = vsub.f32 %v67_v27, %v89_v36 }
  0xc8   :  { %v124_v51 = vadd.f32 %v123_v45, %v109_v44  ;;  %v131_v60 = vadd.f32 %v115_v54, %v114_v53  ;;  %v119_v9 = vmul.f32 %v508_v63, %v508_v63  ;;  %v162_v27 = vshrl.u32 %v161_v22, 7  ;;  %v68_v44 = vld [vmem:[#allocation5] sm:$0xff]  ;;  %v69_v54 = vld [vmem:[#allocation7] sm:$0xff] }
  0xc9   :  { %v120_v11 = vmul.f32 %v514_v4, %v514_v4  ;;  %v121_v13 = vmul.f32 %v518_v8, %v518_v8 }
  0xca   :  { %v125_v57 = vadd.f32 %v124_v51, %v110_v50  ;;  %v132_v1 = vadd.f32 %v131_v60, %v116_v59  ;;  %v163_v31 = vsub.s32 0, %v162_v27  ;;  %v167_v35 = vsub.s32 1, %v162_v27 }
  0xcb   :  { %v171_v38 = vsub.s32 2, %v162_v27  ;;  %v175_v39 = vsub.s32 3, %v162_v27  ;;  %v179_v41 = vsub.s32 4, %v162_v27  ;;  %v183_v45 = vsub.s32 5, %v162_v27 }
  0xcc   :  { %v126_v62 = vadd.f32 %v125_v57, %v111_v56  ;;  %v133_v6 = vadd.f32 %v132_v1, %v117_v0  ;;  %v187_v50 = vsub.s32 6, %v162_v27  ;;  %v191_v51 = vsub.s32 7, %v162_v27 }
  0xcd   :  { %v164_v56 = vrot.slane %v68_v44, %v163_v31  ;;  %v168_v57 = vrot.slane %v68_v44, %v167_v35  ;;  %v172_v59 = vrot.slane %v68_v44, %v171_v38  ;;  %v176_v60 = vrot.slane %v68_v44, %v175_v39 }
  0xce   :  { %v127_v3 = vadd.f32 %v126_v62, %v112_v61  ;;  %v134_v10 = vadd.f32 %v133_v6, %v118_v5  ;;  %v180_v61 = vrot.slane %v68_v44, %v179_v41  ;;  %v184_v62 = vrot.slane %v68_v44, %v183_v45 }
  0xcf   :  { %v188_v0 = vrot.slane %v68_v44, %v187_v50  ;;  %v192_v1 = vrot.slane %v68_v44, %v191_v51  ;;  %v245_v5 = vrot.slane %v69_v54, %v171_v38  ;;  %v249_v6 = vrot.slane %v69_v54, %v175_v39 }
  0xd0   :  { %v128_v7 = vadd.f32 %v127_v3, %v113_v2  ;;  %v135_v12 = vadd.f32 %v134_v10, %v119_v9  ;;  %v237_v2 = vrot.slane %v69_v54, %v163_v31  ;;  %v241_v3 = vrot.slane %v69_v54, %v167_v35 }
  0xd1   :  { %v257_v9 = vrot.slane %v69_v54, %v183_v45  ;;  %v261_v10 = vrot.slane %v69_v54, %v187_v50  ;;  %v211_v31 = vmul.f32 %v172_v59, %v486_v48  ;;  %v212_v35 = vmul.f32 %v176_v60, %v492_v52 }
  0xd2   :  { %129 = vadd.xlane.f32.xlu1 %v128_v7  ;;  %v136_v14 = vadd.f32 %v135_v12, %v120_v11  ;;  %v253_v7 = vrot.slane %v69_v54, %v179_v41  ;;  %v265_v11 = vrot.slane %v69_v54, %v191_v51  ;;  %v201_v12 = vmul.f32 %v164_v56, %v462_v32 }
  0xd3   :  { %v213_v38 = vmul.f32 %v180_v61, %v502_v58  ;;  %v214_v39 = vmul.f32 %v184_v62, %v508_v63  ;;  %v215_v41 = vmul.f32 %v188_v0, %v514_v4 }
  0xd4   :  { %v137_v15 = vadd.f32 %v136_v14, %v121_v13  ;;  %v202_v13 = vmul.f32 %v168_v57, %v464_v33  ;;  %v203_v14 = vmul.f32 %v172_v59, %v466_v34 }
  0xd6   :  { %138 = vadd.xlane.f32.xlu1 %v137_v15  ;;  %v204_v15 = vmul.f32 %v176_v60, %v468_v37 }
 0x15b   :  { %v130_v16 = vpop.xlane.xlu1 %129 }
 0x15c   :  { %v140_v17 = vmul.f32 0.0009775171, %v130_v16 }
 0x15e   :  { %330 = vrsqrt.f32 %v140_v17  ;;  %vm144_vm0 = vcmp.eq.f32.partialorder %v140_v17, inf  ;;  %v147_v23 = vand.u32 2147483648, %v140_v17  ;;  %vm146_vm1 = vcmp.eq.f32.partialorder %v140_v17, 0.0 }
 0x15f   :  { %v139_v18 = vpop.xlane.xlu1 %138 }
 0x160   :  { %v141_v19 = vmul.f32 0.0009775171, %v139_v18  ;;  %v206_v18 = vmul.f32 %v184_v62, %v478_v43 }
 0x162   :  { %332 = vrsqrt.f32 %v141_v19  ;;  %vm151_vm2 = vcmp.eq.f32.partialorder %v141_v19, inf  ;;  %v154_v30 = vand.u32 2147483648, %v141_v19  ;;  %vm153_vm3 = vcmp.eq.f32.partialorder %v141_v19, 0.0 }
 0x16b   :  { %v331_v20 = vpop.eup %330 }
 0x16c   :  { %v143_v21 = vmul.f32 %v331_v20, %v140_v17  ;;  %v208_v20 = vmul.f32 %v192_v1, %v498_v55  ;;  %v210_v55 = vmul.f32 %v168_v57, %v484_v47 }
 0x16e   :  { %v145_v24 = vsel %vm144_vm0, %v140_v17, %v143_v21  ;;  %v205_v17 = vmul.f32 %v180_v61, %v474_v40 }
 0x16f   :  { %v148_v25 = vsel %vm146_vm1, %v147_v23, %v145_v24  ;;  %v333_v28 = vpop.eup %332 }
 0x170   :  { %v156_v26 = vadd.f32 1e-06, %v148_v25  ;;  %v150_v29 = vmul.f32 %v333_v28, %v141_v19 }
 0x172   :  { %334 = vrcp.f32 %v156_v26  ;;  %v152_v36 = vsel %vm151_vm2, %v141_v19, %v150_v29  ;;  %v207_v19 = vmul.f32 %v188_v0, %v488_v49  ;;  %v209_v49 = vmul.f32 %v164_v56, %v482_v46 }
 0x173   :  { %v155_v42 = vsel %vm153_vm3, %v154_v30, %v152_v36 }
 0x174   :  { %v157_v53 = vadd.f32 1e-06, %v155_v42  ;;  %v216_v42 = vmul.f32 %v192_v1, %v518_v8 }
 0x176   :  { %336 = vrcp.f32 %v157_v53 }
 0x17f   :  { %v335_v16 = vpop.eup %334 }
 0x180   :  { %v217_v21 = vmul.f32 %v335_v16, %v201_v12  ;;  %v218_v22 = vmul.f32 %v335_v16, %v202_v13  ;;  %v219_v23 = vmul.f32 %v335_v16, %v203_v14  ;;  %v220_v24 = vmul.f32 %v335_v16, %v204_v15 }
 0x181   :  { %v221_v32 = vmul.f32 %v335_v16, %v205_v17  ;;  %v222_v25 = vmul.f32 %v335_v16, %v206_v18  ;;  %v223_v33 = vmul.f32 %v335_v16, %v207_v19  ;;  %v224_v26 = vmul.f32 %v335_v16, %v208_v20 }
 0x182   :  { %v274_v34 = vadd.f32 %v237_v2, %v217_v21  ;;  %v275_v27 = vadd.f32 %v241_v3, %v218_v22  ;;  %v276_v37 = vadd.f32 %v245_v5, %v219_v23  ;;  %v277_v28 = vadd.f32 %v249_v6, %v220_v24 }
 0x183   :  { %v278_v29 = vadd.f32 %v253_v7, %v221_v32  ;;  %v279_v40 = vadd.f32 %v257_v9, %v222_v25  ;;  %v280_v30 = vadd.f32 %v261_v10, %v223_v33  ;;  %v281_v43 = vadd.f32 %v265_v11, %v224_v26  ;;  %v337_v36 = vpop.eup %336 }
 0x184   :  { %290 = vst [vmem:[#allocation8] sm:$0xff] %v274_v34  ;;  %291 = vst [vmem:[#allocation8 + $0x8] sm:$0xff] %v275_v27  ;;  %v225_v46 = vmul.f32 %v337_v36, %v209_v49  ;;  %v226_v44 = vmul.f32 %v337_v36, %v210_v55  ;;  %v227_v47 = vmul.f32 %v337_v36, %v211_v31 }
 0x185   :  { %292 = vst [vmem:[#allocation8 + $0x10] sm:$0xff] %v276_v37  ;;  %293 = vst [vmem:[#allocation8 + $0x18] sm:$0xff] %v277_v28  ;;  %v228_v45 = vmul.f32 %v337_v36, %v212_v35  ;;  %v229_v48 = vmul.f32 %v337_v36, %v213_v38  ;;  %v230_v52 = vmul.f32 %v337_v36, %v214_v39 }
 0x186   :  { %294 = vst [vmem:[#allocation8 + $0x20] sm:$0xff] %v278_v29  ;;  %295 = vst [vmem:[#allocation8 + $0x28] sm:$0xff] %v279_v40  ;;  %v231_v50 = vmul.f32 %v337_v36, %v215_v41  ;;  %v232_v51 = vmul.f32 %v337_v36, %v216_v42  ;;  %v282_v53 = vadd.f32 %v237_v2, %v225_v46 }
 0x187   :  { %296 = vst [vmem:[#allocation8 + $0x30] sm:$0xff] %v280_v30  ;;  %297 = vst [vmem:[#allocation8 + $0x38] sm:$0xff] %v281_v43  ;;  %v283_v54 = vadd.f32 %v241_v3, %v226_v44  ;;  %v284_v56 = vadd.f32 %v245_v5, %v227_v47  ;;  %v285_v58 = vadd.f32 %v249_v6, %v228_v45 }
 0x188   :  { %v286_v57 = vadd.f32 %v253_v7, %v229_v48  ;;  %v287_v63 = vadd.f32 %v257_v9, %v230_v52  ;;  %v288_v59 = vadd.f32 %v261_v10, %v231_v50  ;;  %v289_v4 = vadd.f32 %v265_v11, %v232_v51  ;;  %298 = vst [vmem:[#allocation8 + $0x40] sm:$0xff] %v282_v53 }
 0x189   :  { %299 = vst [vmem:[#allocation8 + $0x48] sm:$0xff] %v283_v54  ;;  %300 = vst [vmem:[#allocation8 + $0x50] sm:$0xff] %v284_v56 }
 0x18a   :  { %301 = vst [vmem:[#allocation8 + $0x58] sm:$0xff] %v285_v58  ;;  %302 = vst [vmem:[#allocation8 + $0x60] sm:$0xff] %v286_v57 }
 0x18b   :  { %303 = vst [vmem:[#allocation8 + $0x68] sm:$0xff] %v287_v63  ;;  %304 = vst [vmem:[#allocation8 + $0x70] sm:$0xff] %v288_v59 }
 0x18c   :  { %305 = vst [vmem:[#allocation8 + $0x78] sm:$0xff] %v289_v4 }
 0x18d   :  { %409 = shalt.err (!%p406_p5)
}
 0x18e   :  { %317 = dma.vmem_to_hbm [thread:$0]  %s312_s2, 2048, %s551_s3, [#allocation4], %s426_s20, %s426_s20, %s427_s21  }
 0x18f   :  { %422 = dma.done.wait [#allocation4], 2048  }
 0x190   :  { %423 = vsyncadd [#allocation4], 4294965248 }
 0x191   :  { %321 = vsyncpa [#allocation3], 1 }
 0x192   :  { %322 = vsyncpa [#allocation6], 1 }
 0x193   :  { %323 = vsyncpa [#allocation4], 1 }

</bundles_post_ra>
